<compile_context>
chip_gen: v5e
topology: v5e:2x2
jax: 0.10.0
libtpu: 0.0.40
codegen_flags: <defaults>
</compile_context>

<pallas_src>
import functools

import jax
import jax.numpy as jnp
import numpy as np
from jax.experimental import pallas as pl
from jax.experimental.pallas import tpu as pltpu


def _round_up(x, m):
    return (x + m - 1) // m * m


def _largest_divisor_leq(n, cap):
    d = max(1, min(n, cap))
    while n % d:
        d -= 1
    return d


def _pad_to(a, shape):
    return jnp.pad(a, [(0, s - d) for d, s in zip(a.shape, shape)])


# ---------------- Pass 1: input projection (parallel over row tiles) ----------
def proj_kernel(x_ref, w_ih_ref, b_ref, gx_ref):
    # x_ref: (TM, Ip)   w_ih_ref: (Ip, 4Hp)   b_ref: (1, 4Hp)   gx_ref: (TM, 4Hp)
    gx_ref[...] = (jnp.dot(x_ref[...], w_ih_ref[...],
                           preferred_element_type=jnp.float32)
                   + b_ref[...])


# ---------------- Pass 2: recurrence over a chunked time grid ----------------
def lstm_recur_kernel(gx_ref, w_hh_ref, w_lin_ref, b_lin_ref, out_ref,
                      h_ref, c_ref, *, hidden, chunk):
    tc = pl.program_id(0)

    @pl.when(tc == 0)
    def _():
        h_ref[...] = jnp.zeros_like(h_ref)   # h0 = zeros
        c_ref[...] = jnp.zeros_like(c_ref)   # c0 = zeros

    w_hh = w_hh_ref[...]   # hoisted load, reused for every timestep in the chunk

    def step(s, carry):
        h, c = carry
        # gates = precomputed (x_t @ W_ih^T + bias)  +  h @ W_hh^T
        gates = gx_ref[s] + jnp.dot(h, w_hh, preferred_element_type=jnp.float32)
        # lane-aligned gate slices (hidden is a multiple of 128)
        i_g = jax.nn.sigmoid(gates[:, 0 * hidden:1 * hidden])
        f_g = jax.nn.sigmoid(gates[:, 1 * hidden:2 * hidden])
        g_g = jnp.tanh(gates[:, 2 * hidden:3 * hidden])
        o_g = jax.nn.sigmoid(gates[:, 3 * hidden:4 * hidden])
        c_new = f_g * c + i_g * g_g
        h_new = o_g * jnp.tanh(c_new)
        return (h_new, c_new)

    # carry h/c in values (vregs) across the chunk; write back once per chunk
    h, c = jax.lax.fori_loop(0, chunk, step, (h_ref[...], c_ref[...]),
                             unroll=True)
    h_ref[...] = h
    c_ref[...] = c

    # Linear head on the last timestep's hidden state (lane-dense padded O)
    @pl.when(tc == pl.num_programs(0) - 1)
    def _():
        out_ref[...] = (jnp.dot(h, w_lin_ref[...],
                                preferred_element_type=jnp.float32)
                        + b_lin_ref[...]).astype(out_ref.dtype)


# ---------------- parameter preparation (transpose / fuse / pad) -------------
def prepare_params(raw, inputs_size, hidden, out_size):
    """PyTorch-layout params -> padded, right-multiply kernel layout."""
    w_ih, w_hh, b_ih, b_hh, w_lin, b_lin = raw
    I, H, O = inputs_size, hidden, out_size
    Ip, Hp, Op = _round_up(I, 128), _round_up(H, 128), _round_up(O, 128)

    # (4H, I) -> (I, 4, H) -> pad each gate block -> (Ip, 4*Hp)
    w_ih_p = _pad_to(w_ih.reshape(4, H, I).transpose(2, 0, 1),
                     (Ip, 4, Hp)).reshape(Ip, 4 * Hp)
    # (4H, H) -> (H_in, 4, H_out) -> pad -> (Hp, 4*Hp)
    w_hh_p = _pad_to(w_hh.reshape(4, H, H).transpose(2, 0, 1),
                     (Hp, 4, Hp)).reshape(Hp, 4 * Hp)
    # fused bias, per-gate padded -> (1, 4*Hp)
    b_p = _pad_to((b_ih + b_hh).reshape(4, H), (4, Hp)).reshape(1, 4 * Hp)
    # Linear head: (O, H) -> (Hp, Op), (1, Op)
    w_lin_p = _pad_to(w_lin.T, (Hp, Op))
    b_lin_p = _pad_to(b_lin.reshape(1, O), (1, Op))
    return (w_ih_p, w_hh_p, b_p, w_lin_p, b_lin_p)


# ---------------- forward wrapper --------------------------------------------
def lstm_models_forward(x, prepared, out_size):
    """x: (B, T, I) float32 (batch_first, like the PyTorch module)."""
    w_ih_p, w_hh_p, b_p, w_lin_p, b_lin_p = prepared
    B, T, I = x.shape
    Ip = w_ih_p.shape[0]
    Hp = w_hh_p.shape[0]
    Op = w_lin_p.shape[1]
    Bp = _round_up(B, 8)
    O = out_size

    # pad batch/feature dims, go time-major, flatten rows for one big GEMM
    x_p = jnp.zeros((Bp, T, Ip), jnp.float32).at[:B, :, :I].set(x)
    x_rows = jnp.transpose(x_p, (1, 0, 2)).reshape(T * Bp, Ip)   # (T*Bp, Ip)

    # ---- pass 1: parallel input projection -------------------------------
    rows = T * Bp
    t_rows = _largest_divisor_leq(T, max(1, 512 // Bp))
    tm = t_rows * Bp                                             # row tile
    gx_rows = pl.pallas_call(
        proj_kernel,
        out_shape=jax.ShapeDtypeStruct((rows, 4 * Hp), jnp.float32),
        grid_spec=pltpu.PrefetchScalarGridSpec(
            num_scalar_prefetch=0,
            grid=(rows // tm,),
            in_specs=[
                pl.BlockSpec((tm, Ip), lambda r: (r, 0)),        # x rows
                pl.BlockSpec((Ip, 4 * Hp), lambda r: (0, 0)),    # W_ih^T
                pl.BlockSpec((1, 4 * Hp), lambda r: (0, 0)),     # fused bias
            ],
            out_specs=pl.BlockSpec((tm, 4 * Hp), lambda r: (r, 0)),
        ),
        compiler_params=pltpu.CompilerParams(
            dimension_semantics=("parallel",)),
    )(x_rows, w_ih_p, b_p)
    gx = gx_rows.reshape(T, Bp, 4 * Hp)

    # ---- pass 2: sequential recurrence + in-kernel Linear head ------------
    tc = _largest_divisor_leq(T, 4)                              # timesteps/chunk
    kernel = functools.partial(lstm_recur_kernel, hidden=Hp, chunk=tc)
    out_p = pl.pallas_call(
        kernel,
        out_shape=jax.ShapeDtypeStruct((Bp, Op), jnp.float32),
        grid_spec=pltpu.PrefetchScalarGridSpec(
            num_scalar_prefetch=0,
            grid=(T // tc,),
            in_specs=[
                pl.BlockSpec((tc, Bp, 4 * Hp), lambda t: (t, 0, 0)),  # gates_x
                pl.BlockSpec((Hp, 4 * Hp), lambda t: (0, 0)),         # W_hh^T
                pl.BlockSpec((Hp, Op), lambda t: (0, 0)),             # W_lin^T
                pl.BlockSpec((1, Op), lambda t: (0, 0)),              # b_lin
            ],
            out_specs=pl.BlockSpec((Bp, Op), lambda t: (0, 0)),
            scratch_shapes=[
                pltpu.VMEM((Bp, Hp), jnp.float32),   # h state (persists)
                pltpu.VMEM((Bp, Hp), jnp.float32),   # c state (persists)
            ],
        ),
        compiler_params=pltpu.CompilerParams(
            dimension_semantics=("arbitrary",)),     # recurrence -> sequential
    )(gx, w_hh_p, w_lin_p, b_lin_p)

    return out_p[:B, :O]


# ---------------- init & pure-JAX reference ----------------------------------
def init_params(key, inputs_size, hidden, out_size):
    """PyTorch-default-style init U(-1/sqrt(H), 1/sqrt(H))."""
    k = jax.random.split(key, 6)
    s = 1.0 / np.sqrt(hidden)
    w_ih = jax.random.uniform(k[0], (4 * hidden, inputs_size), jnp.float32, -s, s)
    w_hh = jax.random.uniform(k[1], (4 * hidden, hidden), jnp.float32, -s, s)
    b_ih = jax.random.uniform(k[2], (4 * hidden,), jnp.float32, -s, s)
    b_hh = jax.random.uniform(k[3], (4 * hidden,), jnp.float32, -s, s)
    w_lin = jax.random.uniform(k[4], (out_size, hidden), jnp.float32, -s, s)
    b_lin = jax.random.uniform(k[5], (out_size,), jnp.float32, -s, s)
    return (w_ih, w_hh, b_ih, b_hh, w_lin, b_lin)


def reference_forward(x, raw):
    """Plain-JAX reference of the PyTorch forward (for correctness check)."""
    w_ih, w_hh, b_ih, b_hh, w_lin, b_lin = raw
    B, T, I = x.shape
    H = w_hh.shape[1]

    def step(carry, x_t):
        h, c = carry
        gates = x_t @ w_ih.T + h @ w_hh.T + b_ih + b_hh
        i = jax.nn.sigmoid(gates[:, 0 * H:1 * H])
        f = jax.nn.sigmoid(gates[:, 1 * H:2 * H])
        g = jnp.tanh(gates[:, 2 * H:3 * H])
        o = jax.nn.sigmoid(gates[:, 3 * H:4 * H])
        c = f * c + i * g
        h = o * jnp.tanh(c)
        return (h, c), None

    h0 = jnp.zeros((B, H), jnp.float32)
    c0 = jnp.zeros((B, H), jnp.float32)
    (h_T, _), _ = jax.lax.scan(step, (h0, c0), jnp.transpose(x, (1, 0, 2)))
    return h_T @ w_lin.T + b_lin


if __name__ == "__main__":
    B, T, I, H, O = 2, 8, 16, 32, 8

    key = jax.random.PRNGKey(0)
    k_x, k_p = jax.random.split(key)
    x = jax.random.normal(k_x, (B, T, I), jnp.float32)
    raw = init_params(k_p, I, H, O)
    prepared = prepare_params(raw, I, H, O)

    out = lstm_models_forward(x, prepared, O)
    out = jax.block_until_ready(out)

    ref = reference_forward(x, raw)
    np.testing.assert_allclose(np.asarray(out), np.asarray(ref),
                               rtol=1e-5, atol=1e-5)
    print("KERNEL_OK")
</pallas_src>

<mosaic_0001>
module attributes {stable_mosaic.version = 11 : i64} {
  func.func @proj_kernel(%arg0: i32, %arg1: memref<64x128xf32, #tpu.memory_space<vmem>>, %arg2: memref<128x512xf32, #tpu.memory_space<vmem>>, %arg3: memref<1x512xf32, #tpu.memory_space<vmem>>, %arg4: memref<64x512xf32, #tpu.memory_space<vmem>>) attributes {dimension_semantics = [#tpu.dimension_semantics<parallel>], iteration_bounds = array<i64: 1>, scalar_prefetch = 0 : i64, scratch_operands = 0 : i64, tpu.core_type = #tpu.core_type<tc>, window_params = [{transform_indices = @transform_0, window_bounds = array<i64: 64, 128>}, {pipeline_mode = #tpu.pipeline_mode<synchronous>, transform_indices = @transform_1, window_bounds = array<i64: 128, 512>}, {pipeline_mode = #tpu.pipeline_mode<synchronous>, transform_indices = @transform_2, window_bounds = array<i64: 1, 512>}, {transform_indices = @transform_3, window_bounds = array<i64: 64, 512>}]} {
    %c0 = arith.constant 0 : index
    %c0_0 = arith.constant 0 : index
    %0 = vector.load %arg1[%c0, %c0_0] : memref<64x128xf32, #tpu.memory_space<vmem>>, vector<64x128xf32>
    %c0_1 = arith.constant 0 : index
    %c0_2 = arith.constant 0 : index
    %1 = vector.load %arg2[%c0_1, %c0_2] : memref<128x512xf32, #tpu.memory_space<vmem>>, vector<128x512xf32>
    %cst = arith.constant dense<0.000000e+00> : vector<64x512xf32>
    %2 = tpu.matmul %0, %1, %cst {dimension_numbers = #tpu.dot_dimension_numbers<[1], [0], [0], [1], [0, 0, 1, 1], [], []>} : vector<64x128xf32>, vector<128x512xf32>, vector<64x512xf32> -> vector<64x512xf32>
    %c0_3 = arith.constant 0 : index
    %c0_4 = arith.constant 0 : index
    %3 = vector.load %arg3[%c0_3, %c0_4] : memref<1x512xf32, #tpu.memory_space<vmem>>, vector<1x512xf32>
    %4 = vector.broadcast %3 : vector<1x512xf32> to vector<64x512xf32>
    %5 = arith.addf %2, %4 : vector<64x512xf32>
    %c0_5 = arith.constant 0 : index
    %c0_6 = arith.constant 0 : index
    %6 = vector.load %arg4[%c0_5, %c0_6] : memref<64x512xf32, #tpu.memory_space<vmem>>, vector<64x512xf32>
    tpu.vector_store %arg4[%c0_5, %c0_6], %5 {strides = array<i32>} : memref<64x512xf32, #tpu.memory_space<vmem>>, vector<64x512xf32>,
    return
  }
  func.func @transform_0(%arg0: i32) -> (i32, i32) {
    %c0_i32 = arith.constant 0 : i32
    %c0_i32_0 = arith.constant 0 : i32
    return %arg0, %c0_i32 : i32, i32
  }
  func.func @transform_1(%arg0: i32) -> (i32, i32) {
    %c0_i32 = arith.constant 0 : i32
    %c0_i32_0 = arith.constant 0 : i32
    %c0_i32_1 = arith.constant 0 : i32
    return %c0_i32, %c0_i32_0 : i32, i32
  }
  func.func @transform_2(%arg0: i32) -> (i32, i32) {
    %c0_i32 = arith.constant 0 : i32
    %c0_i32_0 = arith.constant 0 : i32
    %c0_i32_1 = arith.constant 0 : i32
    return %c0_i32, %c0_i32_0 : i32, i32
  }
  func.func @transform_3(%arg0: i32) -> (i32, i32) {
    %c0_i32 = arith.constant 0 : i32
    %c0_i32_0 = arith.constant 0 : i32
    return %arg0, %c0_i32 : i32, i32
  }
}

</mosaic_0001>

<bundles_post_ra>
// kernel: tpu_custom_call.1
= control target key start
LH: loop header
LB: loop body
LE: loop exit
PB: predicated region body
PF: predicated region fallthrough
CT: control target
= control target key end

     0   :  { %8 = vsyncpa [#allocation3], 0  ;;  %s554_s0 = inlined_call_operand.hbm [shape: f32[64,128], index: 0, kind: input, shape index: {}]   ;;  %s555_s1 = inlined_call_operand.hbm [shape: f32[128,512], index: 1, kind: input, shape index: {}]   ;;  %s556_s2 = inlined_call_operand.hbm [shape: f32[1,512], index: 2, kind: input, shape index: {}]   ;;  %s557_s3 = inlined_call_operand.hbm [shape: f32[64,512], index: 3, kind: output, shape index: {}]  }
   0x1   :  { %9 = vsyncpa [#allocation6], 0  ;;  %s28_s14 = sshll.u32 %s555_s1, 4  ;;  %s29_s14 = int_to_ptr.hbm [resolvable:$true] %s28_s14 }
   0x2   :  { %10 = vsyncpa [#allocation4], 0  ;;  %s468_s15 = smov [#allocation5]   ;;  %s15_s19 = sshll.u32 %s554_s0, 4  ;;  %s16_s19 = int_to_ptr.hbm [resolvable:$true] %s15_s19 }
   0x3   :  { %s30_s16 = sshll.u32 %s468_s15, 4  ;;  %s469_s20 = smov 512   ;;  %s31_s16 = int_to_ptr.vmem [resolvable:$true] %s30_s16 }
   0x4   :  { %s470_s21 = smov 32   ;;  %s471_s22 = smov [#allocation2]  }
   0x5   :  { %36 = dma.hbm_to_vmem [thread:$0]  %s29_s14, 8192, %s31_s16, [#allocation6], %s469_s20, %s469_s20, %s470_s21  }
   0x6   :  { %s17_s23 = sshll.u32 %s471_s22, 4  ;;  %s472_s1 = smov 128   ;;  %s18_s23 = int_to_ptr.vmem [resolvable:$true] %s17_s23 }
   0x7   :  { %s473_s24 = smov 8   ;;  %s42_s27 = sshll.u32 %s556_s2, 4  ;;  %s43_s27 = int_to_ptr.hbm [resolvable:$true] %s42_s27 }
   0x8   :  { %23 = dma.hbm_to_vmem [thread:$0]  %s16_s19, 1024, %s18_s23, [#allocation3], %s472_s1, %s472_s1, %s473_s24  }
   0x9   :  { %s474_s28 = smov [#allocation7]  }
   0xa   :  { %s44_s0 = sshll.u32 %s474_s28, 4  ;;  %s45_s0 = int_to_ptr.vmem [resolvable:$true] %s44_s0 }
   0xb   :  { %47 = dma.hbm_to_vmem [thread:$0]  %s43_s27, 64, %s45_s0, [#allocation6]  }
   0xc   :  { %462 = dma.done.wait [#allocation3], 1024  }
   0xd   :  { %463 = vsyncadd [#allocation3], 4294966272 }
   0xe   :  { %464 = dma.done.wait [#allocation6], 8256  }
   0xf   :  { %465 = vsyncadd [#allocation6], 4294959040  ;;  %v130_v0 = vld [vmem:[#allocation5 + $0x1f0] sm:$0xff]  ;;  %v131_v1 = vld [vmem:[#allocation5 + $0x1f8] sm:$0xff]  ;;  %s475_s2 = smov [#allocation8]   ;;  %s344_s5 = sshll.u32 %s557_s3, 4  ;;  %s345_s5 = int_to_ptr.hbm [resolvable:$true] %s344_s5 }
  0x10   :  { %v126_v2 = vld [vmem:[#allocation5 + $0x1d0] sm:$0xff]  ;;  %224 = vmatpush.msra.mxu2 %v130_v0  ;;  %265 = vmatpush.msra.mxu3 %v131_v1  ;;  %v127_v3 = vld [vmem:[#allocation5 + $0x1d8] sm:$0xff]  ;;  %v128_v6 = vld [vmem:[#allocation5 + $0x1e0] sm:$0xff]  ;;  %s342_s29 = sshll.u32 %s475_s2, 4  ;;  %s343_s29 = int_to_ptr.vmem [resolvable:$true] %s342_s29 }
  0x11   :  { %v122_v4 = vld [vmem:[#allocation5 + $0x1b0] sm:$0xff]  ;;  %v123_v5 = vld [vmem:[#allocation5 + $0x1b8] sm:$0xff]  ;;  %v129_v7 = vld [vmem:[#allocation5 + $0x1e8] sm:$0xff]  ;;  %142 = vmatpush.msra.mxu0 %v128_v6 }
  0x12   :  { %225 = vmatpush.msra.mxu2 %v126_v2  ;;  %266 = vmatpush.msra.mxu3 %v127_v3  ;;  %v124_v8 = vld [vmem:[#allocation5 + $0x1c0] sm:$0xff]  ;;  %v125_v9 = vld [vmem:[#allocation5 + $0x1c8] sm:$0xff]  ;;  %v118_v10 = vld [vmem:[#allocation5 + $0x190] sm:$0xff] }
  0x13   :  { %183 = vmatpush.msra.mxu1 %v129_v7  ;;  %v119_v11 = vld [vmem:[#allocation5 + $0x198] sm:$0xff]  ;;  %v120_v12 = vld [vmem:[#allocation5 + $0x1a0] sm:$0xff]  ;;  %v121_v13 = vld [vmem:[#allocation5 + $0x1a8] sm:$0xff]  ;;  %143 = vmatpush.msra.mxu0 %v124_v8 }
  0x14   :  { %226 = vmatpush.msra.mxu2 %v122_v4  ;;  %267 = vmatpush.msra.mxu3 %v123_v5  ;;  %v114_v14 = vld [vmem:[#allocation5 + $0x170] sm:$0xff]  ;;  %v115_v15 = vld [vmem:[#allocation5 + $0x178] sm:$0xff]  ;;  %v116_v16 = vld [vmem:[#allocation5 + $0x180] sm:$0xff] }
  0x15   :  { %184 = vmatpush.msra.mxu1 %v125_v9  ;;  %v117_v17 = vld [vmem:[#allocation5 + $0x188] sm:$0xff]  ;;  %144 = vmatpush.msra.mxu0 %v120_v12  ;;  %v110_v18 = vld [vmem:[#allocation5 + $0x150] sm:$0xff]  ;;  %v111_v19 = vld [vmem:[#allocation5 + $0x158] sm:$0xff] }
  0x16   :  { %227 = vmatpush.msra.mxu2 %v118_v10  ;;  %268 = vmatpush.msra.mxu3 %v119_v11  ;;  %v112_v20 = vld [vmem:[#allocation5 + $0x160] sm:$0xff]  ;;  %v113_v21 = vld [vmem:[#allocation5 + $0x168] sm:$0xff]  ;;  %v106_v22 = vld [vmem:[#allocation5 + $0x130] sm:$0xff] }
  0x17   :  { %185 = vmatpush.msra.mxu1 %v121_v13  ;;  %145 = vmatpush.msra.mxu0 %v116_v16  ;;  %v107_v23 = vld [vmem:[#allocation5 + $0x138] sm:$0xff]  ;;  %v108_v24 = vld [vmem:[#allocation5 + $0x140] sm:$0xff]  ;;  %v109_v25 = vld [vmem:[#allocation5 + $0x148] sm:$0xff] }
  0x18   :  { %228 = vmatpush.msra.mxu2 %v114_v14  ;;  %269 = vmatpush.msra.mxu3 %v115_v15  ;;  %v102_v26 = vld [vmem:[#allocation5 + $0x110] sm:$0xff]  ;;  %v103_v27 = vld [vmem:[#allocation5 + $0x118] sm:$0xff]  ;;  %v104_v28 = vld [vmem:[#allocation5 + $0x120] sm:$0xff] }
  0x19   :  { %186 = vmatpush.msra.mxu1 %v117_v17  ;;  %146 = vmatpush.msra.mxu0 %v112_v20  ;;  %v105_v29 = vld [vmem:[#allocation5 + $0x128] sm:$0xff]  ;;  %v98_v30 = vld [vmem:[#allocation5 + $0xf0] sm:$0xff]  ;;  %v99_v31 = vld [vmem:[#allocation5 + $0xf8] sm:$0xff] }
  0x1a   :  { %229 = vmatpush.msra.mxu2 %v110_v18  ;;  %270 = vmatpush.msra.mxu3 %v111_v19  ;;  %v100_v32 = vld [vmem:[#allocation5 + $0x100] sm:$0xff]  ;;  %v101_v33 = vld [vmem:[#allocation5 + $0x108] sm:$0xff]  ;;  %v94_v34 = vld [vmem:[#allocation5 + $0xd0] sm:$0xff] }
  0x1b   :  { %187 = vmatpush.msra.mxu1 %v113_v21  ;;  %147 = vmatpush.msra.mxu0 %v108_v24  ;;  %v95_v35 = vld [vmem:[#allocation5 + $0xd8] sm:$0xff]  ;;  %v96_v36 = vld [vmem:[#allocation5 + $0xe0] sm:$0xff]  ;;  %v97_v37 = vld [vmem:[#allocation5 + $0xe8] sm:$0xff] }
  0x1c   :  { %230 = vmatpush.msra.mxu2 %v106_v22  ;;  %271 = vmatpush.msra.mxu3 %v107_v23  ;;  %v90_v38 = vld [vmem:[#allocation5 + $0xb0] sm:$0xff]  ;;  %v91_v39 = vld [vmem:[#allocation5 + $0xb8] sm:$0xff]  ;;  %v92_v40 = vld [vmem:[#allocation5 + $0xc0] sm:$0xff] }
  0x1d   :  { %188 = vmatpush.msra.mxu1 %v109_v25  ;;  %148 = vmatpush.msra.mxu0 %v104_v28  ;;  %v93_v41 = vld [vmem:[#allocation5 + $0xc8] sm:$0xff]  ;;  %v86_v42 = vld [vmem:[#allocation5 + $0x90] sm:$0xff]  ;;  %v87_v43 = vld [vmem:[#allocation5 + $0x98] sm:$0xff] }
  0x1e   :  { %231 = vmatpush.msra.mxu2 %v102_v26  ;;  %272 = vmatpush.msra.mxu3 %v103_v27  ;;  %v88_v44 = vld [vmem:[#allocation5 + $0xa0] sm:$0xff]  ;;  %v89_v45 = vld [vmem:[#allocation5 + $0xa8] sm:$0xff]  ;;  %v82_v46 = vld [vmem:[#allocation5 + $0x70] sm:$0xff] }
  0x1f   :  { %189 = vmatpush.msra.mxu1 %v105_v29  ;;  %149 = vmatpush.msra.mxu0 %v100_v32  ;;  %v83_v47 = vld [vmem:[#allocation5 + $0x78] sm:$0xff]  ;;  %v84_v48 = vld [vmem:[#allocation5 + $0x80] sm:$0xff]  ;;  %v85_v49 = vld [vmem:[#allocation5 + $0x88] sm:$0xff] }
  0x20   :  { %232 = vmatpush.msra.mxu2 %v98_v30  ;;  %273 = vmatpush.msra.mxu3 %v99_v31  ;;  %v78_v50 = vld [vmem:[#allocation5 + $0x50] sm:$0xff]  ;;  %v79_v51 = vld [vmem:[#allocation5 + $0x58] sm:$0xff]  ;;  %v80_v52 = vld [vmem:[#allocation5 + $0x60] sm:$0xff] }
  0x21   :  { %190 = vmatpush.msra.mxu1 %v101_v33  ;;  %150 = vmatpush.msra.mxu0 %v96_v36  ;;  %v81_v53 = vld [vmem:[#allocation5 + $0x68] sm:$0xff]  ;;  %v74_v54 = vld [vmem:[#allocation5 + $0x30] sm:$0xff]  ;;  %v75_v55 = vld [vmem:[#allocation5 + $0x38] sm:$0xff] }
  0x22   :  { %233 = vmatpush.msra.mxu2 %v94_v34  ;;  %274 = vmatpush.msra.mxu3 %v95_v35  ;;  %v76_v56 = vld [vmem:[#allocation5 + $0x40] sm:$0xff]  ;;  %v77_v57 = vld [vmem:[#allocation5 + $0x48] sm:$0xff]  ;;  %v70_v58 = vld [vmem:[#allocation5 + $0x10] sm:$0xff] }
  0x23   :  { %191 = vmatpush.msra.mxu1 %v97_v37  ;;  %151 = vmatpush.msra.mxu0 %v92_v40  ;;  %v71_v59 = vld [vmem:[#allocation5 + $0x18] sm:$0xff]  ;;  %v60_v60 = vld [vmem:[#allocation2] sm:$0xff]  ;;  %v73_v62 = vld [vmem:[#allocation5 + $0x28] sm:$0xff] }
  0x24   :  { %234 = vmatpush.msra.mxu2 %v90_v38  ;;  %275 = vmatpush.msra.mxu3 %v91_v39  ;;  %v72_v61 = vld [vmem:[#allocation5 + $0x20] sm:$0xff]  ;;  %v69_v0 = vld [vmem:[#allocation5 + $0x8] sm:$0xff]  ;;  %v62_v2 = vld [vmem:[#allocation2 + $0x10] sm:$0xff] }
  0x25   :  { %192 = vmatpush.msra.mxu1 %v93_v41  ;;  %152 = vmatpush.msra.mxu0 %v88_v44  ;;  %v68_v63 = vld [vmem:[#allocation5] sm:$0xff]  ;;  %v61_v1 = vld [vmem:[#allocation2 + $0x8] sm:$0xff]  ;;  %v63_v3 = vld [vmem:[#allocation2 + $0x18] sm:$0xff] }
  0x26   :  { %235 = vmatpush.msra.mxu2 %v86_v42  ;;  %276 = vmatpush.msra.mxu3 %v87_v43  ;;  %v64_v4 = vld [vmem:[#allocation2 + $0x20] sm:$0xff]  ;;  %v65_v5 = vld [vmem:[#allocation2 + $0x28] sm:$0xff]  ;;  %v66_v6 = vld [vmem:[#allocation2 + $0x30] sm:$0xff] }
  0x27   :  { %193 = vmatpush.msra.mxu1 %v89_v45  ;;  %153 = vmatpush.msra.mxu0 %v84_v48  ;;  %v67_v7 = vld [vmem:[#allocation2 + $0x38] sm:$0xff]  ;;  %v132_v8 = vld [vmem:[#allocation7] sm:$0xf] }
  0x28   :  { %236 = vmatpush.msra.mxu2 %v82_v46  ;;  %277 = vmatpush.msra.mxu3 %v83_v47  ;;  %v508_v9 = vperm.slane %v132_v8, 0  ;;  %v510_v10 = vperm.slane %v132_v8, 1  ;;  %v512_v11 = vperm.slane %v132_v8, 2  ;;  %v514_v12 = vperm.slane %v132_v8, 3 }
  0x29   :  { %194 = vmatpush.msra.mxu1 %v85_v49  ;;  %154 = vmatpush.msra.mxu0 %v80_v52 }
  0x2a   :  { %237 = vmatpush.msra.mxu2 %v78_v50  ;;  %278 = vmatpush.msra.mxu3 %v79_v51 }
  0x2b   :  { %195 = vmatpush.msra.mxu1 %v81_v53  ;;  %155 = vmatpush.msra.mxu0 %v76_v56 }
  0x2c   :  { %238 = vmatpush.msra.mxu2 %v74_v54  ;;  %279 = vmatpush.msra.mxu3 %v75_v55 }
  0x2d   :  { %196 = vmatpush.msra.mxu1 %v77_v57  ;;  %156 = vmatpush.msra.mxu0 %v72_v61 }
  0x2e   :  { %239 = vmatpush.msra.mxu2 %v70_v58  ;;  %280 = vmatpush.msra.mxu3 %v71_v59 }
  0x2f   :  { %240 = vmatmul.f32.vlgmr.msra.gmra.mxu2 %v60_v60  ;;  %281 = vmatmul.f32.vlgmr.msra.gmra.mxu3 %v60_v60 }
  0x30   :  { %197 = vmatpush.msra.mxu1 %v73_v62  ;;  %157 = vmatpush.msra.mxu0 %v68_v63 }
  0x31   :  { %158 = vmatmul.f32.vlgmr.msra.gmra.mxu0 %v60_v60 }
  0x32   :  { %198 = vmatpush.msra.mxu1 %v69_v0 }
  0x33   :  { %199 = vmatmul.f32.vlgmr.msra.gmra.mxu1 %v60_v60 }
  0x37   :  { %243 = vmatmul.f32.gmra.mxu2 %v61_v1  ;;  %284 = vmatmul.f32.gmra.mxu3 %v61_v1 }
  0x39   :  { %161 = vmatmul.f32.gmra.mxu0 %v61_v1 }
  0x3b   :  { %202 = vmatmul.f32.gmra.mxu1 %v61_v1 }
  0x3f   :  { %246 = vmatmul.f32.gmra.mxu2 %v62_v2  ;;  %287 = vmatmul.f32.gmra.mxu3 %v62_v2 }
  0x41   :  { %164 = vmatmul.f32.gmra.mxu0 %v62_v2 }
  0x43   :  { %205 = vmatmul.f32.gmra.mxu1 %v62_v2 }
  0x47   :  { %249 = vmatmul.f32.gmra.mxu2 %v63_v3  ;;  %290 = vmatmul.f32.gmra.mxu3 %v63_v3 }
  0x49   :  { %167 = vmatmul.f32.gmra.mxu0 %v63_v3 }
  0x4b   :  { %208 = vmatmul.f32.gmra.mxu1 %v63_v3 }
  0x4f   :  { %252 = vmatmul.f32.gmra.mxu2 %v64_v4  ;;  %293 = vmatmul.f32.gmra.mxu3 %v64_v4 }
  0x51   :  { %170 = vmatmul.f32.gmra.mxu0 %v64_v4 }
  0x53   :  { %211 = vmatmul.f32.gmra.mxu1 %v64_v4 }
  0x57   :  { %255 = vmatmul.f32.gmra.mxu2 %v65_v5  ;;  %296 = vmatmul.f32.gmra.mxu3 %v65_v5 }
  0x59   :  { %173 = vmatmul.f32.gmra.mxu0 %v65_v5 }
  0x5b   :  { %214 = vmatmul.f32.gmra.mxu1 %v65_v5 }
  0x5f   :  { %258 = vmatmul.f32.gmra.mxu2 %v66_v6  ;;  %299 = vmatmul.f32.gmra.mxu3 %v66_v6 }
  0x61   :  { %176 = vmatmul.f32.gmra.mxu0 %v66_v6 }
  0x63   :  { %217 = vmatmul.f32.gmra.mxu1 %v66_v6 }
  0x67   :  { %261 = vmatmul.f32.gmra.mxu2 %v67_v7  ;;  %302 = vmatmul.f32.gmra.mxu3 %v67_v7 }
  0x69   :  { %179 = vmatmul.f32.gmra.mxu0 %v67_v7 }
  0x6b   :  { %220 = vmatmul.f32.gmra.mxu1 %v67_v7 }
  0xae   :  { %v159_v13 = vpop.f32.mrf.mxu0 }
  0xaf   :  { %v160_v15 = vadd.f32 %v159_v13, %v508_v9 }
  0xb0   :  { %v200_v14 = vpop.f32.mrf.mxu1 }
  0xb1   :  { %v201_v16 = vadd.f32 %v200_v14, %v510_v10  ;;  %306 = vst [vmem:[#allocation8] sm:$0xff] %v160_v15 }
  0xb2   :  { %v241_v17 = vpop.f32.mrf.mxu2  ;;  %v282_v18 = vpop.f32.mrf.mxu3 }
  0xb3   :  { %v242_v19 = vadd.f32 %v241_v17, %v512_v11  ;;  %v283_v20 = vadd.f32 %v282_v18, %v514_v12  ;;  %307 = vst [vmem:[#allocation8 + $0x8] sm:$0xff] %v201_v16 }
  0xb5   :  { %308 = vst [vmem:[#allocation8 + $0x10] sm:$0xff] %v242_v19 }
  0xb6   :  { %309 = vst [vmem:[#allocation8 + $0x18] sm:$0xff] %v283_v20  ;;  %v162_v21 = vpop.f32.mrf.mxu0 }
  0xb7   :  { %v163_v23 = vadd.f32 %v162_v21, %v508_v9 }
  0xb8   :  { %v203_v22 = vpop.f32.mrf.mxu1 }
  0xb9   :  { %v204_v24 = vadd.f32 %v203_v22, %v510_v10  ;;  %310 = vst [vmem:[#allocation8 + $0x20] sm:$0xff] %v163_v23 }
  0xba   :  { %v244_v25 = vpop.f32.mrf.mxu2  ;;  %v285_v26 = vpop.f32.mrf.mxu3 }
  0xbb   :  { %v245_v27 = vadd.f32 %v244_v25, %v512_v11  ;;  %v286_v28 = vadd.f32 %v285_v26, %v514_v12  ;;  %311 = vst [vmem:[#allocation8 + $0x28] sm:$0xff] %v204_v24 }
  0xbd   :  { %312 = vst [vmem:[#allocation8 + $0x30] sm:$0xff] %v245_v27 }
  0xbe   :  { %313 = vst [vmem:[#allocation8 + $0x38] sm:$0xff] %v286_v28  ;;  %v165_v29 = vpop.f32.mrf.mxu0 }
  0xbf   :  { %v166_v31 = vadd.f32 %v165_v29, %v508_v9 }
  0xc0   :  { %v206_v30 = vpop.f32.mrf.mxu1 }
  0xc1   :  { %v207_v32 = vadd.f32 %v206_v30, %v510_v10  ;;  %314 = vst [vmem:[#allocation8 + $0x40] sm:$0xff] %v166_v31 }
  0xc2   :  { %v247_v33 = vpop.f32.mrf.mxu2  ;;  %v288_v34 = vpop.f32.mrf.mxu3 }
  0xc3   :  { %v248_v35 = vadd.f32 %v247_v33, %v512_v11  ;;  %v289_v36 = vadd.f32 %v288_v34, %v514_v12  ;;  %315 = vst [vmem:[#allocation8 + $0x48] sm:$0xff] %v207_v32 }
  0xc5   :  { %316 = vst [vmem:[#allocation8 + $0x50] sm:$0xff] %v248_v35 }
  0xc6   :  { %317 = vst [vmem:[#allocation8 + $0x58] sm:$0xff] %v289_v36  ;;  %v168_v37 = vpop.f32.mrf.mxu0 }
  0xc7   :  { %v169_v39 = vadd.f32 %v168_v37, %v508_v9 }
  0xc8   :  { %v209_v38 = vpop.f32.mrf.mxu1 }
  0xc9   :  { %v210_v40 = vadd.f32 %v209_v38, %v510_v10  ;;  %318 = vst [vmem:[#allocation8 + $0x60] sm:$0xff] %v169_v39 }
  0xca   :  { %v250_v41 = vpop.f32.mrf.mxu2  ;;  %v291_v42 = vpop.f32.mrf.mxu3 }
  0xcb   :  { %v251_v43 = vadd.f32 %v250_v41, %v512_v11  ;;  %v292_v44 = vadd.f32 %v291_v42, %v514_v12  ;;  %319 = vst [vmem:[#allocation8 + $0x68] sm:$0xff] %v210_v40 }
  0xcd   :  { %320 = vst [vmem:[#allocation8 + $0x70] sm:$0xff] %v251_v43 }
  0xce   :  { %321 = vst [vmem:[#allocation8 + $0x78] sm:$0xff] %v292_v44  ;;  %v171_v45 = vpop.f32.mrf.mxu0 }
  0xcf   :  { %v172_v47 = vadd.f32 %v171_v45, %v508_v9 }
  0xd0   :  { %v212_v46 = vpop.f32.mrf.mxu1 }
  0xd1   :  { %v213_v48 = vadd.f32 %v212_v46, %v510_v10  ;;  %322 = vst [vmem:[#allocation8 + $0x80] sm:$0xff] %v172_v47 }
  0xd2   :  { %v253_v49 = vpop.f32.mrf.mxu2  ;;  %v294_v50 = vpop.f32.mrf.mxu3 }
  0xd3   :  { %v254_v51 = vadd.f32 %v253_v49, %v512_v11  ;;  %v295_v52 = vadd.f32 %v294_v50, %v514_v12  ;;  %323 = vst [vmem:[#allocation8 + $0x88] sm:$0xff] %v213_v48 }
  0xd5   :  { %324 = vst [vmem:[#allocation8 + $0x90] sm:$0xff] %v254_v51 }
  0xd6   :  { %325 = vst [vmem:[#allocation8 + $0x98] sm:$0xff] %v295_v52  ;;  %v174_v53 = vpop.f32.mrf.mxu0 }
  0xd7   :  { %v175_v55 = vadd.f32 %v174_v53, %v508_v9 }
  0xd8   :  { %v215_v54 = vpop.f32.mrf.mxu1 }
  0xd9   :  { %v216_v56 = vadd.f32 %v215_v54, %v510_v10  ;;  %326 = vst [vmem:[#allocation8 + $0xa0] sm:$0xff] %v175_v55 }
  0xda   :  { %v256_v57 = vpop.f32.mrf.mxu2  ;;  %v297_v58 = vpop.f32.mrf.mxu3 }
  0xdb   :  { %v257_v59 = vadd.f32 %v256_v57, %v512_v11  ;;  %v298_v60 = vadd.f32 %v297_v58, %v514_v12  ;;  %327 = vst [vmem:[#allocation8 + $0xa8] sm:$0xff] %v216_v56 }
  0xdd   :  { %328 = vst [vmem:[#allocation8 + $0xb0] sm:$0xff] %v257_v59 }
  0xde   :  { %329 = vst [vmem:[#allocation8 + $0xb8] sm:$0xff] %v298_v60  ;;  %v177_v61 = vpop.f32.mrf.mxu0 }
  0xdf   :  { %v178_v63 = vadd.f32 %v177_v61, %v508_v9 }
  0xe0   :  { %v218_v62 = vpop.f32.mrf.mxu1 }
  0xe1   :  { %v219_v0 = vadd.f32 %v218_v62, %v510_v10  ;;  %330 = vst [vmem:[#allocation8 + $0xc0] sm:$0xff] %v178_v63 }
  0xe2   :  { %v259_v1 = vpop.f32.mrf.mxu2  ;;  %v300_v2 = vpop.f32.mrf.mxu3 }
  0xe3   :  { %v260_v3 = vadd.f32 %v259_v1, %v512_v11  ;;  %v301_v4 = vadd.f32 %v300_v2, %v514_v12  ;;  %331 = vst [vmem:[#allocation8 + $0xc8] sm:$0xff] %v219_v0 }
  0xe5   :  { %332 = vst [vmem:[#allocation8 + $0xd0] sm:$0xff] %v260_v3 }
  0xe6   :  { %333 = vst [vmem:[#allocation8 + $0xd8] sm:$0xff] %v301_v4  ;;  %v180_v5 = vpop.f32.mrf.mxu0 }
  0xe7   :  { %v181_v7 = vadd.f32 %v180_v5, %v508_v9 }
  0xe8   :  { %v221_v6 = vpop.f32.mrf.mxu1 }
  0xe9   :  { %v222_v8 = vadd.f32 %v221_v6, %v510_v10  ;;  %334 = vst [vmem:[#allocation8 + $0xe0] sm:$0xff] %v181_v7 }
  0xea   :  { %v262_v13 = vpop.f32.mrf.mxu2  ;;  %v303_v14 = vpop.f32.mrf.mxu3 }
  0xeb   :  { %v263_v15 = vadd.f32 %v262_v13, %v512_v11  ;;  %v304_v16 = vadd.f32 %v303_v14, %v514_v12  ;;  %335 = vst [vmem:[#allocation8 + $0xe8] sm:$0xff] %v222_v8 }
  0xed   :  { %336 = vst [vmem:[#allocation8 + $0xf0] sm:$0xff] %v263_v15 }
  0xee   :  { %337 = vst [vmem:[#allocation8 + $0xf8] sm:$0xff] %v304_v16 }
  0xef   :  { %350 = dma.vmem_to_hbm [thread:$0]  %s343_s29, 4096, %s345_s5, [#allocation4], %s469_s20, %s469_s20, %s470_s21  }
  0xf0   :  { %466 = dma.done.wait [#allocation4], 4096  }
  0xf1   :  { %467 = vsyncadd [#allocation4], 4294963200 }
  0xf2   :  { %355 = vsyncpa [#allocation3], 1 }
  0xf3   :  { %356 = vsyncpa [#allocation6], 1 }
  0xf4   :  { %357 = vsyncpa [#allocation4], 1 }

</bundles_post_ra>
